<compile_context>
chip_gen: v6e
topology: v6e:2x2x1
jax: 0.10.0
libtpu: 0.0.40
codegen_flags: <defaults>
</compile_context>

<pallas_src>
import jax
import jax.numpy as jnp
import numpy as np
from jax.experimental import pallas as pl
from jax.experimental.pallas import tpu as pltpu

_LANES = 128


def _round_up(x: int, m: int) -> int:
    return (x + m - 1) // m * m


def _pick_tile_rows(num_image_rows: int, width: int, max_rows_per_tile: int) -> int:
    """Rows per tile: a whole number of image rows (multiple of W -> no halo),
    dividing the total row count, sublane(8)-aligned unless it is the whole
    slab (full-array blocks are always legal)."""
    k_cap = max(1, max_rows_per_tile // max(width, 1))
    for k in range(min(k_cap, num_image_rows), 0, -1):
        if num_image_rows % k == 0 and (k * width) % 8 == 0:
            return k * width
    return num_image_rows * width          # single whole-slab tile fallback


# ----------------------------------- kernels ---------------------------------

def _make_pass_a(tile_rows: int, mm_dtype, has_projection: bool):
    """conv1 (1x3) [+ 1x1 projection conv] + per-channel sum / sumsq stats."""

    def shifted_cat(x, mlo, mhi):
        # [ x[w-1] (0 at w==0) | x[w] | x[w+1] (0 at w==W-1) ]  lane-concat.
        x_m1 = pltpu.roll(x, 1, 0) * mlo
        x_p1 = pltpu.roll(x, tile_rows - 1, 0) * mhi
        return jnp.concatenate([x_m1, x, x_p1], axis=1).astype(mm_dtype)

    if has_projection:

        def kernel(mlo_ref, mhi_ref, x_ref, w1_ref, ws_ref,
                   y1_ref, sc_ref, st_ref):
            t = pl.program_id(0)
            x = x_ref[...]
            x3 = shifted_cat(x, mlo_ref[...], mhi_ref[...])
            y1 = jnp.dot(x3, w1_ref[...], preferred_element_type=jnp.float32)
            sc = jnp.dot(x.astype(mm_dtype), ws_ref[...],
                         preferred_element_type=jnp.float32)
            y1_ref[...] = y1
            sc_ref[...] = sc
            part = jnp.concatenate(
                [jnp.sum(y1, axis=0, keepdims=True),
                 jnp.sum(y1 * y1, axis=0, keepdims=True),
                 jnp.sum(sc, axis=0, keepdims=True),
                 jnp.sum(sc * sc, axis=0, keepdims=True)], axis=0)

            @pl.when(t == 0)
            def _init():
                st_ref[...] = part

            @pl.when(t > 0)
            def _acc():
                st_ref[...] = st_ref[...] + part

    else:

        def kernel(mlo_ref, mhi_ref, x_ref, w1_ref, y1_ref, st_ref):
            t = pl.program_id(0)
            x = x_ref[...]
            x3 = shifted_cat(x, mlo_ref[...], mhi_ref[...])
            y1 = jnp.dot(x3, w1_ref[...], preferred_element_type=jnp.float32)
            y1_ref[...] = y1
            part = jnp.concatenate(
                [jnp.sum(y1, axis=0, keepdims=True),
                 jnp.sum(y1 * y1, axis=0, keepdims=True)], axis=0)

            @pl.when(t == 0)
            def _init():
                st_ref[...] = part

            @pl.when(t > 0)
            def _acc():
                st_ref[...] = st_ref[...] + part

    return kernel


def _make_pass_b(tile_rows: int, mm_dtype):
    """BN1 scale/shift + ReLU + conv2 (1x3) + per-channel sum / sumsq stats."""

    def kernel(mlo_ref, mhi_ref, y1_ref, s1_ref, t1_ref, w2_ref,
               y2_ref, st_ref):
        t = pl.program_id(0)
        h = jnp.maximum(y1_ref[...] * s1_ref[...] + t1_ref[...], 0.0)
        h_m1 = pltpu.roll(h, 1, 0) * mlo_ref[...]
        h_p1 = pltpu.roll(h, tile_rows - 1, 0) * mhi_ref[...]
        h3 = jnp.concatenate([h_m1, h, h_p1], axis=1).astype(mm_dtype)
        y2 = jnp.dot(h3, w2_ref[...], preferred_element_type=jnp.float32)
        y2_ref[...] = y2
        part = jnp.concatenate(
            [jnp.sum(y2, axis=0, keepdims=True),
             jnp.sum(y2 * y2, axis=0, keepdims=True)], axis=0)

        @pl.when(t == 0)
        def _init():
            st_ref[...] = part

        @pl.when(t > 0)
        def _acc():
            st_ref[...] = st_ref[...] + part

    return kernel


def _pass_c_projection(y2_ref, s2_ref, t2_ref, sc_ref, ss_ref, ts_ref, o_ref):
    y = y2_ref[...] * s2_ref[...] + t2_ref[...]
    s = sc_ref[...] * ss_ref[...] + ts_ref[...]
    o_ref[...] = jnp.maximum(y + s, 0.0)


def _pass_c_identity(y2_ref, s2_ref, t2_ref, x_ref, o_ref):
    o_ref[...] = jnp.maximum(
        y2_ref[...] * s2_ref[...] + t2_ref[...] + x_ref[...], 0.0)


# ----------------------------------- wrapper ---------------------------------

def _compiler_params(semantics, tile_bytes):
    # ~2x double-buffering + in-kernel temporaries; floor at the 32 MiB scoped
    # default (physically safe on v5e/v6e (128 MiB) and v7x (64 MiB)).
    limit = int(min(max(6 * tile_bytes, 32 * 1024 * 1024), 110 * 1024 * 1024))
    return pltpu.CompilerParams(dimension_semantics=semantics,
                                vmem_limit_bytes=limit)


def residual_block(x_nchw, params, *, eps: float = 1e-5,
                   max_rows_per_tile: int = 1024,
                   matmul_dtype=jnp.float32):
    """Pallas implementation of ResidualBlock.forward.  x_nchw: (N, Cin, H, W)."""
    n, cin, h, w = x_nchw.shape
    cout = params["w1"].shape[-1]
    has_proj = "ws" in params
    rows = n * h * w
    cpi = _round_up(cin, _LANES)
    cpo = _round_up(cout, _LANES)
    f32 = jnp.float32

    tile = _pick_tile_rows(n * h, w, max_rows_per_tile)
    num_tiles = rows // tile
    grid = (num_tiles,)

    # Layout: NCHW -> NHWC -> (rows, C), channel-padded to 128-lane multiples.
    # TODO(synk): accept NHWC in/out at the API boundary to drop the transposes.
    x_flat = jnp.transpose(x_nchw, (0, 2, 3, 1)).reshape(rows, cin)
    x_flat = jnp.pad(x_flat.astype(f32), ((0, 0), (0, cpi - cin)))

    # Weights: tap-major (3, Ci, Co) -> lane-padded -> (3*Ci_pad, Co_pad).
    w1 = jnp.pad(params["w1"], ((0, 0), (0, cpi - cin), (0, cpo - cout)))
    w1 = w1.reshape(3 * cpi, cpo).astype(matmul_dtype)
    w2 = jnp.pad(params["w2"], ((0, 0), (0, cpo - cout), (0, cpo - cout)))
    w2 = w2.reshape(3 * cpo, cpo).astype(matmul_dtype)
    pad_c = lambda p: jnp.pad(p.astype(f32), ((0, 0), (0, cpo - cout)))
    g1, b1 = pad_c(params["g1"]), pad_c(params["b1"])
    g2, b2 = pad_c(params["g2"]), pad_c(params["b2"])
    if has_proj:
        ws = jnp.pad(params["ws"],
                     ((0, cpi - cin), (0, cpo - cout))).astype(matmul_dtype)
        gs, bs = pad_c(params["gs"]), pad_c(params["bs"])

    # Width-boundary masks, shared by every tile (tiles hold whole image rows).
    wpos = jnp.arange(tile, dtype=jnp.int32) % w
    m_lo = (wpos != 0).astype(f32).reshape(tile, 1)        # zero at w == 0
    m_hi = (wpos != (w - 1)).astype(f32).reshape(tile, 1)  # zero at w == W-1

    row_spec = lambda c: pl.BlockSpec((tile, c), lambda t: (t, 0))
    rep_spec = lambda shape: pl.BlockSpec(shape, lambda t: (0, 0))
    mask_specs = [rep_spec((tile, 1)), rep_spec((tile, 1))]

    # ------------- pass A: conv1 (+ 1x1 projection) + BN stats --------------
    n_stats_a = 4 if has_proj else 2
    a_inputs = [m_lo, m_hi, x_flat, w1] + ([ws] if has_proj else [])
    a_in_specs = mask_specs + [row_spec(cpi), rep_spec((3 * cpi, cpo))] \
        + ([rep_spec((cpi, cpo))] if has_proj else [])
    a_out_shape = [jax.ShapeDtypeStruct((rows, cpo), f32)] \
        + ([jax.ShapeDtypeStruct((rows, cpo), f32)] if has_proj else []) \
        + [jax.ShapeDtypeStruct((n_stats_a, cpo), f32)]
    a_out_specs = [row_spec(cpo)] + ([row_spec(cpo)] if has_proj else []) \
        + [rep_spec((n_stats_a, cpo))]
    a_tile_bytes = 4 * (tile * (4 * cpi + 2 * cpo) + 4 * cpi * cpo
                        + n_stats_a * cpo + 2 * tile)
    a_flops = 2 * rows * cpo * (3 * cpi + (cpi if has_proj else 0)) \
        + 8 * rows * cpo
    a_bytes = 4 * (rows * (cpi + (2 if has_proj else 1) * cpo)
                   + (4 if has_proj else 3) * cpi * cpo)
    a_out = pl.pallas_call(
        _make_pass_a(tile, matmul_dtype, has_proj),
        out_shape=a_out_shape,
        grid=grid,
        in_specs=a_in_specs,
        out_specs=a_out_specs,
        compiler_params=_compiler_params(("arbitrary",), a_tile_bytes),
        cost_estimate=pl.CostEstimate(flops=int(a_flops), transcendentals=0,
                                      bytes_accessed=int(a_bytes)),
    )(*a_inputs)
    if has_proj:
        y1, sc, st_a = a_out
    else:
        y1, st_a = a_out

    # Fold batch statistics into per-channel scale/shift (tiny, plain JAX).
    inv_rows = 1.0 / rows

    def fold(s, ss, g, b):
        mean = s * inv_rows
        var = jnp.maximum(ss * inv_rows - mean * mean, 0.0)
        scale = g * jax.lax.rsqrt(var + eps)
        return scale, b - mean * scale

    s1, t1 = fold(st_a[0:1], st_a[1:2], g1, b1)
    if has_proj:
        s_s, t_s = fold(st_a[2:3], st_a[3:4], gs, bs)

    # ------------- pass B: BN1 + ReLU + conv2 + BN2 stats -------------------
    b_inputs = [m_lo, m_hi, y1, s1, t1, w2]
    b_in_specs = mask_specs + [row_spec(cpo), rep_spec((1, cpo)),
                               rep_spec((1, cpo)), rep_spec((3 * cpo, cpo))]
    b_tile_bytes = 4 * (tile * 6 * cpo + 3 * cpo * cpo + 4 * cpo + 2 * tile)
    b_flops = 2 * rows * cpo * 3 * cpo + 10 * rows * cpo
    b_bytes = 4 * (2 * rows * cpo + 3 * cpo * cpo)
    y2, st_b = pl.pallas_call(
        _make_pass_b(tile, matmul_dtype),
        out_shape=[jax.ShapeDtypeStruct((rows, cpo), f32),
                   jax.ShapeDtypeStruct((2, cpo), f32)],
        grid=grid,
        in_specs=b_in_specs,
        out_specs=[row_spec(cpo), rep_spec((2, cpo))],
        compiler_params=_compiler_params(("arbitrary",), b_tile_bytes),
        cost_estimate=pl.CostEstimate(flops=int(b_flops), transcendentals=0,
                                      bytes_accessed=int(b_bytes)),
    )(*b_inputs)
    s2, t2 = fold(st_b[0:1], st_b[1:2], g2, b2)

    # ------------- pass C: BN2 (+BNs) + residual add + ReLU -----------------
    if has_proj:
        c_kernel = _pass_c_projection
        c_inputs = [y2, s2, t2, sc, s_s, t_s]
        c_in_specs = [row_spec(cpo), rep_spec((1, cpo)), rep_spec((1, cpo)),
                      row_spec(cpo), rep_spec((1, cpo)), rep_spec((1, cpo))]
    else:
        c_kernel = _pass_c_identity
        c_inputs = [y2, s2, t2, x_flat]     # identity => cin == cout => cpi == cpo
        c_in_specs = [row_spec(cpo), rep_spec((1, cpo)), rep_spec((1, cpo)),
                      row_spec(cpi)]
    c_tile_bytes = 4 * tile * 4 * cpo
    c_flops = 7 * rows * cpo
    c_bytes = 4 * rows * 3 * cpo
    out_flat = pl.pallas_call(
        c_kernel,
        out_shape=jax.ShapeDtypeStruct((rows, cpo), f32),
        grid=grid,
        in_specs=c_in_specs,
        out_specs=row_spec(cpo),
        compiler_params=_compiler_params(("parallel",), c_tile_bytes),
        cost_estimate=pl.CostEstimate(flops=int(c_flops), transcendentals=0,
                                      bytes_accessed=int(c_bytes)),
    )(*c_inputs)

    out = out_flat[:, :cout].reshape(n, h, w, cout)
    return jnp.transpose(out, (0, 3, 1, 2))               # NHWC -> NCHW


# ----------------------------- reference (plain JAX) --------------------------

def residual_block_ref(x_nchw, params, *, eps: float = 1e-5):
    x = jnp.transpose(x_nchw, (0, 2, 3, 1)).astype(jnp.float32)  # NHWC

    def conv1x3(a, wk):  # wk: (3, Ci, Co)
        ap = jnp.pad(a, ((0, 0), (0, 0), (1, 1), (0, 0)))
        hi = jax.lax.Precision.HIGHEST
        return (jnp.einsum('nhwc,cd->nhwd', ap[:, :, 0:-2], wk[0], precision=hi)
                + jnp.einsum('nhwc,cd->nhwd', ap[:, :, 1:-1], wk[1], precision=hi)
                + jnp.einsum('nhwc,cd->nhwd', ap[:, :, 2:], wk[2], precision=hi))

    def bn(y, g, b):
        m = jnp.mean(y, axis=(0, 1, 2), keepdims=True)
        v = jnp.mean((y - m) ** 2, axis=(0, 1, 2), keepdims=True)
        return (y - m) * jax.lax.rsqrt(v + eps) * g.reshape(1, 1, 1, -1) \
            + b.reshape(1, 1, 1, -1)

    y = jax.nn.relu(bn(conv1x3(x, params["w1"]), params["g1"], params["b1"]))
    y = bn(conv1x3(y, params["w2"]), params["g2"], params["b2"])
    if "ws" in params:
        sc = bn(jnp.einsum('nhwc,cd->nhwd', x, params["ws"],
                           precision=jax.lax.Precision.HIGHEST),
                params["gs"], params["bs"])
    else:
        sc = x
    out = jax.nn.relu(y + sc)
    return jnp.transpose(out, (0, 3, 1, 2))


# --------------------------------- parameter init -----------------------------

def init_params(key, in_channels, out_channels, stride=1):
    """Deterministic synthetic parameters with the shapes implied by __init__.

    Conv weights stored tap-major / channels-last: (3, Ci, Co) for the 1x3
    convs, (Ci, Co) for the 1x1 projection.  BN gamma/beta stored as (1, C).
    (In the PyTorch module `stride` only toggles the projection shortcut.)"""
    ks = jax.random.split(key, 11)

    def conv_w(k, taps, ci, co):
        scale = 1.0 / np.sqrt(taps * ci)
        return (jax.random.normal(k, (taps, ci, co), jnp.float32) * scale
                if taps > 1 else
                jax.random.normal(k, (ci, co), jnp.float32) * scale)

    p = {
        "w1": conv_w(ks[0], 3, in_channels, out_channels),
        "g1": jax.random.uniform(ks[1], (1, out_channels), jnp.float32, 0.5, 1.5),
        "b1": jax.random.normal(ks[2], (1, out_channels), jnp.float32) * 0.1,
        "w2": conv_w(ks[3], 3, out_channels, out_channels),
        "g2": jax.random.uniform(ks[4], (1, out_channels), jnp.float32, 0.5, 1.5),
        "b2": jax.random.normal(ks[5], (1, out_channels), jnp.float32) * 0.1,
    }
    if stride != 1 or in_channels != out_channels:
        p["ws"] = conv_w(ks[6], 1, in_channels, out_channels)
        p["gs"] = jax.random.uniform(ks[7], (1, out_channels), jnp.float32, 0.5, 1.5)
        p["bs"] = jax.random.normal(ks[8], (1, out_channels), jnp.float32) * 0.1
    return p


if __name__ == "__main__":
    key = jax.random.PRNGKey(0)
    kx1, kp1, kx2, kp2 = jax.random.split(key, 4)

    # Case 1: channel change -> projection shortcut.  A small tile cap forces
    # the multi-tile path (4 tiles of 64 rows) so the cross-tile BN-stat
    # accumulation is exercised.
    N, CIN, H, W, COUT = 2, 4, 8, 16, 8
    x = jax.random.normal(kx1, (N, CIN, H, W), jnp.float32)
    params = init_params(kp1, CIN, COUT)
    out = jax.block_until_ready(residual_block(x, params, max_rows_per_tile=64))
    assert out.shape == (N, COUT, H, W)
    ref = residual_block_ref(x, params)
    np.testing.assert_allclose(np.asarray(out), np.asarray(ref),
                               rtol=1e-3, atol=1e-3)

    # Case 2: same channels -> identity shortcut, default (single-tile) path.
    x2 = jax.random.normal(kx2, (N, COUT, H, W), jnp.float32)
    params2 = init_params(kp2, COUT, COUT)
    out2 = jax.block_until_ready(residual_block(x2, params2))
    assert out2.shape == (N, COUT, H, W)
    ref2 = residual_block_ref(x2, params2)
    np.testing.assert_allclose(np.asarray(out2), np.asarray(ref2),
                               rtol=1e-3, atol=1e-3)

    print("KERNEL_OK")
</pallas_src>

<mosaic_0001>
module attributes {stable_mosaic.version = 11 : i64} {
  func.func @kernel(%arg0: i32, %arg1: memref<64x1xf32, #tpu.memory_space<vmem>>, %arg2: memref<64x1xf32, #tpu.memory_space<vmem>>, %arg3: memref<64x128xf32, #tpu.memory_space<vmem>>, %arg4: memref<384x128xf32, #tpu.memory_space<vmem>>, %arg5: memref<128x128xf32, #tpu.memory_space<vmem>>, %arg6: memref<64x128xf32, #tpu.memory_space<vmem>>, %arg7: memref<64x128xf32, #tpu.memory_space<vmem>>, %arg8: memref<4x128xf32, #tpu.memory_space<vmem>>) attributes {dimension_semantics = [#tpu.dimension_semantics<arbitrary>], iteration_bounds = array<i64: 4>, scalar_prefetch = 0 : i64, scratch_operands = 0 : i64, tpu.core_type = #tpu.core_type<tc>, window_params = [{pipeline_mode = #tpu.pipeline_mode<synchronous>, transform_indices = @transform_0, window_bounds = array<i64: 64, 1>}, {pipeline_mode = #tpu.pipeline_mode<synchronous>, transform_indices = @transform_1, window_bounds = array<i64: 64, 1>}, {transform_indices = @transform_2, window_bounds = array<i64: 64, 128>}, {pipeline_mode = #tpu.pipeline_mode<synchronous>, transform_indices = @transform_3, window_bounds = array<i64: 384, 128>}, {pipeline_mode = #tpu.pipeline_mode<synchronous>, transform_indices = @transform_4, window_bounds = array<i64: 128, 128>}, {transform_indices = @transform_5, window_bounds = array<i64: 64, 128>}, {transform_indices = @transform_6, window_bounds = array<i64: 64, 128>}, {pipeline_mode = #tpu.pipeline_mode<synchronous>, transform_indices = @transform_7, window_bounds = array<i64: 4, 128>}]} {
    %c0 = arith.constant 0 : index
    %c0_0 = arith.constant 0 : index
    %0 = vector.load %arg3[%c0, %c0_0] : memref<64x128xf32, #tpu.memory_space<vmem>>, vector<64x128xf32>
    %c0_1 = arith.constant 0 : index
    %c0_2 = arith.constant 0 : index
    %1 = vector.load %arg1[%c0_1, %c0_2] : memref<64x1xf32, #tpu.memory_space<vmem>>, vector<64x1xf32>
    %c0_3 = arith.constant 0 : index
    %c0_4 = arith.constant 0 : index
    %2 = vector.load %arg2[%c0_3, %c0_4] : memref<64x1xf32, #tpu.memory_space<vmem>>, vector<64x1xf32>
    %c1_i32 = arith.constant 1 : i32
    %3 = tpu.dynamic_rotate %0 by %c1_i32 dim 0 : vector<64x128xf32>, i32 -> vector<64x128xf32>
    %4 = vector.broadcast %1 : vector<64x1xf32> to vector<64x128xf32>
    %5 = arith.mulf %3, %4 : vector<64x128xf32>
    %c63_i32 = arith.constant 63 : i32
    %6 = tpu.dynamic_rotate %0 by %c63_i32 dim 0 : vector<64x128xf32>, i32 -> vector<64x128xf32>
    %7 = vector.broadcast %2 : vector<64x1xf32> to vector<64x128xf32>
    %8 = arith.mulf %6, %7 : vector<64x128xf32>
    %9 = tpu.concatenate %5, %0, %8 in 1 : vector<64x128xf32>, vector<64x128xf32>, vector<64x128xf32> -> vector<64x384xf32>
    %c0_5 = arith.constant 0 : index
    %c0_6 = arith.constant 0 : index
    %10 = vector.load %arg4[%c0_5, %c0_6] : memref<384x128xf32, #tpu.memory_space<vmem>>, vector<384x128xf32>
    %cst = arith.constant dense<0.000000e+00> : vector<64x128xf32>
    %11 = tpu.matmul %9, %10, %cst {dimension_numbers = #tpu.dot_dimension_numbers<[1], [0], [0], [1], [0, 0, 1, 1], [], []>} : vector<64x384xf32>, vector<384x128xf32>, vector<64x128xf32> -> vector<64x128xf32>
    %c0_7 = arith.constant 0 : index
    %c0_8 = arith.constant 0 : index
    %12 = vector.load %arg5[%c0_7, %c0_8] : memref<128x128xf32, #tpu.memory_space<vmem>>, vector<128x128xf32>
    %cst_9 = arith.constant dense<0.000000e+00> : vector<64x128xf32>
    %13 = tpu.matmul %0, %12, %cst_9 {dimension_numbers = #tpu.dot_dimension_numbers<[1], [0], [0], [1], [0, 0, 1, 1], [], []>} : vector<64x128xf32>, vector<128x128xf32>, vector<64x128xf32> -> vector<64x128xf32>
    %c0_10 = arith.constant 0 : index
    %c0_11 = arith.constant 0 : index
    %14 = vector.load %arg6[%c0_10, %c0_11] : memref<64x128xf32, #tpu.memory_space<vmem>>, vector<64x128xf32>
    tpu.vector_store %arg6[%c0_10, %c0_11], %11 {strides = array<i32>} : memref<64x128xf32, #tpu.memory_space<vmem>>, vector<64x128xf32>,
    %c0_12 = arith.constant 0 : index
    %c0_13 = arith.constant 0 : index
    %15 = vector.load %arg7[%c0_12, %c0_13] : memref<64x128xf32, #tpu.memory_space<vmem>>, vector<64x128xf32>
    tpu.vector_store %arg7[%c0_12, %c0_13], %13 {strides = array<i32>} : memref<64x128xf32, #tpu.memory_space<vmem>>, vector<64x128xf32>,
    %cst_14 = arith.constant dense<0.000000e+00> : vector<128xf32>
    %16 = vector.multi_reduction <add>, %11, %cst_14 [0] : vector<64x128xf32> to vector<128xf32>
    %17 = vector.shape_cast %16 : vector<128xf32> to vector<1x128xf32>
    %18 = arith.mulf %11, %11 : vector<64x128xf32>
    %cst_15 = arith.constant dense<0.000000e+00> : vector<128xf32>
    %19 = vector.multi_reduction <add>, %18, %cst_15 [0] : vector<64x128xf32> to vector<128xf32>
    %20 = vector.shape_cast %19 : vector<128xf32> to vector<1x128xf32>
    %cst_16 = arith.constant dense<0.000000e+00> : vector<128xf32>
    %21 = vector.multi_reduction <add>, %13, %cst_16 [0] : vector<64x128xf32> to vector<128xf32>
    %22 = vector.shape_cast %21 : vector<128xf32> to vector<1x128xf32>
    %23 = arith.mulf %13, %13 : vector<64x128xf32>
    %cst_17 = arith.constant dense<0.000000e+00> : vector<128xf32>
    %24 = vector.multi_reduction <add>, %23, %cst_17 [0] : vector<64x128xf32> to vector<128xf32>
    %25 = vector.shape_cast %24 : vector<128xf32> to vector<1x128xf32>
    %26 = tpu.concatenate %17, %20, %22, %25 in 0 : vector<1x128xf32>, vector<1x128xf32>, vector<1x128xf32>, vector<1x128xf32> -> vector<4x128xf32>
    %c0_i32 = arith.constant 0 : i32
    %27 = arith.cmpi eq, %arg0, %c0_i32 : i32
    %28 = arith.extui %27 : i1 to i32
    %c0_i32_18 = arith.constant 0 : i32
    %29 = arith.cmpi ne, %28, %c0_i32_18 : i32
    scf.if %29 {
      %c0_21 = arith.constant 0 : index
      %c0_22 = arith.constant 0 : index
      %33 = vector.load %arg8[%c0_21, %c0_22] : memref<4x128xf32, #tpu.memory_space<vmem>>, vector<4x128xf32>
      tpu.vector_store %arg8[%c0_21, %c0_22], %26 {strides = array<i32>} : memref<4x128xf32, #tpu.memory_space<vmem>>, vector<4x128xf32>,
    } else {
    }
    %c0_i32_19 = arith.constant 0 : i32
    %30 = arith.cmpi sgt, %arg0, %c0_i32_19 : i32
    %31 = arith.extui %30 : i1 to i32
    %c0_i32_20 = arith.constant 0 : i32
    %32 = arith.cmpi ne, %31, %c0_i32_20 : i32
    scf.if %32 {
      %c0_21 = arith.constant 0 : index
      %c0_22 = arith.constant 0 : index
      %33 = vector.load %arg8[%c0_21, %c0_22] : memref<4x128xf32, #tpu.memory_space<vmem>>, vector<4x128xf32>
      %34 = arith.addf %33, %26 : vector<4x128xf32>
      %c0_23 = arith.constant 0 : index
      %c0_24 = arith.constant 0 : index
      %35 = vector.load %arg8[%c0_23, %c0_24] : memref<4x128xf32, #tpu.memory_space<vmem>>, vector<4x128xf32>
      tpu.vector_store %arg8[%c0_23, %c0_24], %34 {strides = array<i32>} : memref<4x128xf32, #tpu.memory_space<vmem>>, vector<4x128xf32>,
    } else {
    }
    return
  }
  func.func @transform_0(%arg0: i32) -> (i32, i32) {
    %c0_i32 = arith.constant 0 : i32
    %c0_i32_0 = arith.constant 0 : i32
    %c0_i32_1 = arith.constant 0 : i32
    return %c0_i32, %c0_i32_0 : i32, i32
  }
  func.func @transform_1(%arg0: i32) -> (i32, i32) {
    %c0_i32 = arith.constant 0 : i32
    %c0_i32_0 = arith.constant 0 : i32
    %c0_i32_1 = arith.constant 0 : i32
    return %c0_i32, %c0_i32_0 : i32, i32
  }
  func.func @transform_2(%arg0: i32) -> (i32, i32) {
    %c0_i32 = arith.constant 0 : i32
    %c0_i32_0 = arith.constant 0 : i32
    return %arg0, %c0_i32 : i32, i32
  }
  func.func @transform_3(%arg0: i32) -> (i32, i32) {
    %c0_i32 = arith.constant 0 : i32
    %c0_i32_0 = arith.constant 0 : i32
    %c0_i32_1 = arith.constant 0 : i32
    return %c0_i32, %c0_i32_0 : i32, i32
  }
  func.func @transform_4(%arg0: i32) -> (i32, i32) {
    %c0_i32 = arith.constant 0 : i32
    %c0_i32_0 = arith.constant 0 : i32
    %c0_i32_1 = arith.constant 0 : i32
    return %c0_i32, %c0_i32_0 : i32, i32
  }
  func.func @transform_5(%arg0: i32) -> (i32, i32) {
    %c0_i32 = arith.constant 0 : i32
    %c0_i32_0 = arith.constant 0 : i32
    return %arg0, %c0_i32 : i32, i32
  }
  func.func @transform_6(%arg0: i32) -> (i32, i32) {
    %c0_i32 = arith.constant 0 : i32
    %c0_i32_0 = arith.constant 0 : i32
    return %arg0, %c0_i32 : i32, i32
  }
  func.func @transform_7(%arg0: i32) -> (i32, i32) {
    %c0_i32 = arith.constant 0 : i32
    %c0_i32_0 = arith.constant 0 : i32
    %c0_i32_1 = arith.constant 0 : i32
    return %c0_i32, %c0_i32_0 : i32, i32
  }
}

</mosaic_0001>

<bundles_post_ra>
// kernel: tpu_custom_call.1
= control target key start
LH: loop header
LB: loop body
LE: loop exit
PB: predicated region body
PF: predicated region fallthrough
CT: control target
= control target key end

     0   :  { %s2159_s0 = inlined_call_operand.vmem [shape: f32[64,1], index: 0, kind: input, shape index: {}]   ;;  %s2160_s1 = inlined_call_operand.vmem [shape: f32[64,1], index: 1, kind: input, shape index: {}]   ;;  %s2161_s2 = inlined_call_operand.hbm [shape: f32[256,128], index: 2, kind: input, shape index: {}]   ;;  %s2162_s3 = inlined_call_operand.hbm [shape: f32[384,128], index: 3, kind: input, shape index: {}]   ;;  %s2163_s4 = inlined_call_operand.vmem [shape: f32[128,128], index: 4, kind: input, shape index: {}]   ;;  %s2164_s5 = inlined_call_operand.hbm [shape: f32[256,128], index: 5, kind: output, shape index: {0}]   ;;  %s2165_s6 = inlined_call_operand.hbm [shape: f32[256,128], index: 6, kind: output, shape index: {1}]   ;;  %s2166_s7 = inlined_call_operand.hbm [shape: f32[4,128], index: 7, kind: output, shape index: {2}]  }
   0x1   :  { %2174 = sst [smem:[#allocation16_spill]] %s2162_s3 }
   0x2   :  { %13 = vsyncpa [#allocation3], 0 }
   0x3   :  { %15 = vsyncpa [#allocation3 + $0x1], 0 }
   0x4   :  { %16 = vsyncpa [#allocation6], 0 }
   0x5   :  { %17 = vsyncpa [#allocation4], 0 }
   0x6   :  { %19 = vsyncpa [#allocation4 + $0x1], 0 }
   0x7   :  { %20 = vsyncpa [#allocation9], 0 }
   0x8   :  { %22 = vsyncpa [#allocation9 + $0x1], 0  ;;  %s1690_s24 = smov 0   ;;  %s1692_s25 = smov 0  }
   0x9   :  { %s1694_s26 = smov 0   ;;  %s1696_s27 = smov 0  }
   0xa LB: > { %s1711_s28 = sadd.s32 4294967295, %s1638_s27   ;;  %s2167_s29 = sadd.s32 4294967294, %s1638_s27   ;;  %s1638_s27 = sphi %s1696_s27, %s2200_s27   ;;  %s1634_s26 = sphi %s1694_s26, %s2199_s26   ;;  %s1630_s25 = sphi %s1692_s25, %s2198_s25   ;;  %s1626_s24 = sphi %s1690_s24, %s2197_s24  }
   0xb   : > { %p90_p0 = scmp.ne.s32.totalorder %s1630_s25, %s1626_s24  ;;  %p2169_p1 = scmp.eq.s32.totalorder %s1711_s28, 0 }
   0xc   : > { %p162_p3 = scmp.eq.s32.totalorder %s2167_s29, 3  ;;  %p1132_p5 = scmp.ge.s32.totalorder %s1638_s27, 1 }
   0xd   : > { %p1722_p4 = por %p2169_p1, %p90_p0  ;;  %p216_p7 = scmp.lt.s32.totalorder %s1638_s27, 5 }
   0xe   : > { %p1727_p6 = por %p162_p3, %p90_p0  ;;  %s1640_s10 = smov [#allocation5]  }
   0xf   : > { %s2175_s30 = scalar_select %p1722_p4, 1, 0 }
  0x10   : > { %s2176_s8 = scalar_select %p1727_p6, 1, 0 }
  0x11   : > { %p1733_p9 = pnand %p1132_p5, %p216_p7  ;;  %s234_s11 = sshll.u32 %s1640_s10, 4  ;;  %s235_s11 = int_to_ptr.vmem [resolvable:$true] %s234_s11 }
  0x12   : > { %s1746_s13 = sadd.s32 1, %s1638_s27   ;;  %s77_s14 = sadd.s32 1, %s1634_s26 }
  0x13   : > { %s2177_s9 = scalar_select %p1733_p9, 1, 0 }
  0x14   : > { %p1396_p10 = pneg %p1733_p9  ;;  %s74_s15 = ssub.s32 %s1638_s27, %s1746_s13 }
  0x15   : > { %s1469_s16 = scalar_lea.vmem %s235_s11, 6144  ;;  %p1477_p5 = scmp.lt.s32.totalorder %s235_s11, %s235_s11 }
  0x16   : > { %p1741_p11 = pnand %p1396_p10, %p2169_p1  ;;  %p1470_p13 = scmp.ne.s32.totalorder %s235_s11, %s1469_s16 }
  0x17   : > { %p1478_p7 = scmp.lt.s32.totalorder %s1469_s16, %s1469_s16 }
  0x18   : > { %p1460_p12 = pneg %p1741_p11 }
  0x19   : > { %p1479_p8 = por %p1478_p7, %p1477_p5 }
  0x1a   : > { %p1472_p0 = pnand %p1470_p13, %p1460_p12 }
  0x1c   : > { %p1473_p3 = pneg %p1472_p0 }
  0x1e   : > { %p1480_p2 = pnand %p1479_p8, %p1473_p3 }
  0x20   : > { %1483 = shalt.err (!%p1480_p2)
}
  0x21   : > { %s2168_s17 = smov 128   ;;  %s2170_s18 = smov 8  }
  0x22   : > { %s2179_s3 = sld [smem:[#allocation16_spill]]  ;;  %p75_p2 = scmp.eq.s32.totalorder %s74_s15, 0 }
  0x23   : > { %p84_p8 = scmp.ne.s32.totalorder %s1634_s26, %s1630_s25  ;;  %p85_p10 = scmp.eq.s32.totalorder %s1638_s27, 0 }
  0x24   : > { %p1412_p12 = scmp.lt.s32.totalorder %s1638_s27, 4  ;;  %p2180_p0 = scmp.eq.s32.totalorder %s1711_s28, 3 }
  0x25   : > { %s1766_s21 = scalar_select %p75_p2, %s1634_s26, %s77_s14  }
  0x26   : > { %p86_p13 = por %p85_p10, %p84_p8  ;;  %p1770_p3 = por %p2180_p0, %p84_p8 }
  0x27   : > { %s251_s23 = sand.u32 1, %s1634_s26   ;;  %s1155_s10 = sshll.u32 %s1638_s27, 10 }
  0x28   : > { %1399 = dma.hbm_to_vmem [thread:$0]  (!%p1741_p11), %s2179_s3, 6144, %s235_s11, [#allocation6], %s2168_s17, %s2168_s17, %s2170_s18  }
  0x29   : > { %s2181_s22 = scalar_select %p1770_p3, 1, 0 }
  0x2a   : > { %s1135_s12 = sshll.u32 %s251_s23, 6  ;;  %s1779_s19 = scalar_lea.hbm %s2161_s2, %s1155_s10 }
  0x2b   : > { %s255_s11 = scalar_lea.vmem [#allocation2], %s1135_s12  ;;  %p1781_p11 = pnand %p1412_p12, %p86_p13 }
  0x2c   : > { %s262_s14 = sshll.u32 %s255_s11, 4  ;;  %s1787_s20 = scalar_lea.sflag [#allocation3], %s251_s23  ;;  %s1785_s14 = int_to_ptr.vmem [resolvable:$true] %s262_s14 }
  0x2d   : > { %s1484_s17 = scalar_lea.hbm %s1779_s19, 1024  ;;  %p1486_p7 = pneg %p1781_p11 }
  0x2e   : > { %p1485_p5 = scmp.ne.s32.totalorder %s1779_s19, %s1484_s17  ;;  %s1489_s12 = scalar_lea.hbm %s2161_s2, 4096 }
  0x2f   : > { %p1490_p10 = scmp.lt.s32.totalorder %s1779_s19, %s2161_s2  ;;  %p1491_p12 = scmp.lt.s32.totalorder %s1489_s12, %s1484_s17 }
  0x30   : > { %p1487_p2 = pnand %p1486_p7, %p1485_p5 }
  0x31   : > { %p1492_p13 = por %p1491_p12, %p1490_p10 }
  0x32   : > { %p1488_p8 = pneg %p1487_p2 }
  0x34   : > { %p1493_p0 = pnand %p1492_p13, %p1488_p8 }
  0x36   : > { %1496 = shalt.err (!%p1493_p0)
}
  0x37   : > { %s1497_s23 = scalar_lea.vmem %s1785_s14, 1024  ;;  %s1643_s18 = smov [#allocation2]  }
  0x38   : > { %p1498_p1 = scmp.ne.s32.totalorder %s1785_s14, %s1497_s23  ;;  %s1502_s3 = sshll.u32 %s1643_s18, 4  ;;  %s1503_s3 = int_to_ptr.vmem [resolvable:$false] %s1502_s3 }
  0x39   : > { %s1504_s29 = scalar_lea.vmem %s1503_s3, 2048  ;;  %p1505_p2 = scmp.lt.s32.totalorder %s1785_s14, %s1503_s3 }
  0x3a   : > { %p1500_p6 = pnand %p1498_p1, %p1486_p7  ;;  %p1506_p3 = scmp.lt.s32.totalorder %s1504_s29, %s1497_s23 }
  0x3c   : > { %p1501_p5 = pneg %p1500_p6  ;;  %p1507_p4 = por %p1506_p3, %p1505_p2 }
  0x3e   : > { %p1508_p9 = pnand %p1507_p4, %p1501_p5 }
  0x40   : > { %1511 = shalt.err (!%p1508_p9)
}
  0x41   : > { %s2183_s17 = smov 8   ;;  %s2184_s10 = smov 128  }
  0x42   : > { %1403 = dma.hbm_to_vmem [thread:$0]  (!%p1781_p11), %s1779_s19, 1024, %s1785_s14, %s1787_s20, %s2184_s10, %s2184_s10, %s2183_s17  }
  0x43   : > { %p2185_p1 = scmp.ne.s32.totalorder %s2177_s9, 0 }
  0x44   : > { %s1814_s18 = sand.u32 (!%p2185_p1), 1, %s1630_s25   ;;  %p2186_p4 = scmp.ne.s32.totalorder (!%p2185_p1), %s2175_s30, 0 }
  0x45   : > { %274 = sbr.rel (%p2185_p1) target bundleno = 554 (0x22a), region = 40  ;;  %s1817_s3 = sshll.u32 (!%p2185_p1), %s1814_s18, 6 }
  0x46   : > { %s277_s15 = scalar_lea.sflag (!%p2185_p1), [#allocation3], %s1814_s18  ;;  %s1821_s12 = scalar_lea.vmem (!%p2185_p1), [#allocation2], %s1817_s3 }
  0x4a   : > { %1605 = dma.done.wait (%p2186_p4), %s277_s15, 1024  }
  0x4b   : > { %1607 = vsyncadd (%p2186_p4), %s277_s15, 4294966272  ;;  %p2187_p6 = scmp.eq.s32.totalorder %s1711_s28, 0 }
  0x4d   : > { %1609 = dma.done.wait (%p2187_p6), [#allocation6], 6144   ;;  %p2188_p9 = pmov %p2187_p6 }
  0x4e   : > { %v1644_v0 = vmov 0   ;;  %v333_v1 = vld [vmem:[%s2159_s0 + $0x10] sm:$0xff]  ;;  %v331_v2 = vld [vmem:[%s2159_s0] sm:$0xff]  ;;  %v332_v4 = vld [vmem:[%s2159_s0 + $0x8] sm:$0xff]  ;;  %s2037_s20 = scalar_lea.vmem [#allocation7], %s1817_s3  ;;  %vm942_vm2 = vcmask 1040384  }
  0x4f   : > { %1611 = vsyncadd (%p2188_p9), [#allocation6], 4294961152  ;;  %1457 = vset.pattern.permute.xlu1 %v1644_v0  ;;  %1456 = vset.pattern.permute.xlu0 %v1644_v0  ;;  %v339_v3 = vld [vmem:[%s2160_s1] sm:$0xff]  ;;  %v510_v5 = vld [vmem:[#allocation5 + $0xf8] sm:$0xff]  ;;  %vm944_vm3 = vcmask 1041408   ;;  %vm946_vm4 = vcmask 1042432  }
  0x50   : > { %378 = vperm.xlu1 %1457, %v333_v1   ;;  %368 = vperm.xlu0 %1456, %v331_v2   ;;  %v494_v6 = vld [vmem:[#allocation5 + $0x78] sm:$0xff]  ;;  %v340_v8 = vld [vmem:[%s2160_s1 + $0x8] sm:$0xff]  ;;  %v509_v9 = vld [vmem:[#allocation5 + $0xf0] sm:$0xff]  ;;  %p2189_p3 = scmp.ne.s32.totalorder %s1711_s28, 0 }
  0x51   : > { %v334_v7 = vld [vmem:[%s2159_s0 + $0x18] sm:$0xff]  ;;  %1158 = vmatprep.subr.mxu0 %v510_v5  ;;  %v493_v10 = vld [vmem:[#allocation5 + $0x70] sm:$0xff]  ;;  %v508_v11 = vld [vmem:[#allocation5 + $0xe8] sm:$0xff] }
  0x52   : > { %1159 = vmatpush3.msra.mxu0 %v494_v6  ;;  %v526_v12 = vld [vmem:[#allocation5 + $0x178] sm:$0xff]  ;;  %v492_v13 = vld [vmem:[#allocation5 + $0x68] sm:$0xff]  ;;  %v525_v14 = vld [vmem:[#allocation5 + $0x170] sm:$0xff] }
  0x53   : > { %1160 = vmatprep.subr.mxu0 %v509_v9  ;;  %v336_v15 = vld [vmem:[%s2159_s0 + $0x28] sm:$0xff]  ;;  %v335_v16 = vld [vmem:[%s2159_s0 + $0x20] sm:$0xff]  ;;  %1262 = vmatprep.subr.mxu1 %v526_v12  ;;  %v506_v20 = vld [vmem:[#allocation5 + $0xd8] sm:$0xff] }
  0x54   : > { %433 = vperm.xlu1 %1457, %v339_v3   ;;  %373 = vperm.xlu0 %1456, %v332_v4   ;;  %v507_v17 = vld [vmem:[#allocation5 + $0xe0] sm:$0xff]  ;;  %v524_v19 = vld [vmem:[#allocation5 + $0x168] sm:$0xff]  ;;  %v341_v21 = vld [vmem:[%s2160_s1 + $0x10] sm:$0xff]  ;;  %v355_v3 = vlaneseq }
  0x55   : > { %1161 = vmatpush3.msra.mxu0 %v493_v10  ;;  %1263 = vmatpush3.msra.mxu1 %v526_v12  ;;  %v491_v18 = vld [vmem:[#allocation5 + $0x60] sm:$0xff]  ;;  %v337_v22 = vld [vmem:[%s2159_s0 + $0x30] sm:$0xff]  ;;  %v490_v23 = vld [vmem:[#allocation5 + $0x58] sm:$0xff] }
  0x56   : > { %1162 = vmatprep.subr.mxu0 %v508_v11  ;;  %1264 = vmatprep.subr.mxu1 %v525_v14  ;;  %v523_v24 = vld [vmem:[#allocation5 + $0x160] sm:$0xff]  ;;  %v505_v25 = vld [vmem:[#allocation5 + $0xd0] sm:$0xff]  ;;  %v522_v27 = vld [vmem:[#allocation5 + $0x158] sm:$0xff]  ;;  %v1890_v4 = vshrl.u32 %v355_v3, 7 }
  0x57   : > { %1163 = vmatpush3.msra.mxu0 %v492_v13  ;;  %1265 = vmatpush3.msra.mxu1 %v525_v14  ;;  %v489_v26 = vld [vmem:[#allocation5 + $0x50] sm:$0xff]  ;;  %v342_v28 = vld [vmem:[%s2160_s1 + $0x18] sm:$0xff]  ;;  %v504_v30 = vld [vmem:[#allocation5 + $0xc8] sm:$0xff] }
  0x58   : > { %383 = vperm.xlu1 %1457, %v334_v7   ;;  %438 = vperm.xlu0 %1456, %v340_v8   ;;  %v338_v29 = vld [vmem:[%s2159_s0 + $0x38] sm:$0xff]  ;;  %v488_v31 = vld [vmem:[#allocation5 + $0x48] sm:$0xff]  ;;  %v521_v32 = vld [vmem:[#allocation5 + $0x150] sm:$0xff]  ;;  %vm357_vm0 = vcmp.lt.s32.totalorder %v1890_v4, 1  ;;  %vm422_vm1 = vcmp.lt.s32.totalorder %v1890_v4, 7 }
  0x59   : > { %1164 = vmatprep.subr.mxu0 %v507_v17  ;;  %1266 = vmatprep.subr.mxu1 %v524_v19  ;;  %v503_v33 = vld [vmem:[#allocation5 + $0xc0] sm:$0xff]  ;;  %v344_v34 = vld [vmem:[%s2160_s1 + $0x28] sm:$0xff]  ;;  %v502_v38 = vld [vmem:[#allocation5 + $0xb8] sm:$0xff] }
  0x5a   : > { %1165 = vmatpush3.msra.mxu0 %v491_v18  ;;  %1267 = vmatpush3.msra.mxu1 %v524_v19  ;;  %v343_v35 = vld [vmem:[%s2160_s1 + $0x20] sm:$0xff]  ;;  %v520_v37 = vld [vmem:[#allocation5 + $0x148] sm:$0xff]  ;;  %v486_v39 = vld [vmem:[#allocation5 + $0x38] sm:$0xff] }
  0x5b   : > { %1166 = vmatprep.subr.mxu0 %v506_v20  ;;  %1268 = vmatprep.subr.mxu1 %v523_v24  ;;  %v487_v36 = vld [vmem:[#allocation5 + $0x40] sm:$0xff]  ;;  %v346_v41 = vld [vmem:[%s2160_s1 + $0x38] sm:$0xff]  ;;  %v345_v42 = vld [vmem:[%s2160_s1 + $0x30] sm:$0xff] }
  0x5c   : > { %393 = vperm.xlu1 %1457, %v336_v15   ;;  %388 = vperm.xlu0 %1456, %v335_v16   ;;  %v519_v40 = vld [vmem:[#allocation5 + $0x140] sm:$0xff]  ;;  %v501_v43 = vld [vmem:[#allocation5 + $0xb0] sm:$0xff]  ;;  %v518_v45 = vld [vmem:[#allocation5 + $0x138] sm:$0xff] }
  0x5d   : > { %1167 = vmatpush3.msra.mxu0 %v490_v23  ;;  %1269 = vmatpush3.msra.mxu1 %v523_v24  ;;  %v485_v44 = vld [vmem:[#allocation5 + $0x30] sm:$0xff]  ;;  %v500_v46 = vld [vmem:[#allocation5 + $0xa8] sm:$0xff]  ;;  %v499_v49 = vld [vmem:[#allocation5 + $0xa0] sm:$0xff] }
  0x5e   : > { %1168 = vmatprep.subr.mxu0 %v505_v25  ;;  %1270 = vmatprep.subr.mxu1 %v522_v27  ;;  %v484_v47 = vld [vmem:[#allocation5 + $0x28] sm:$0xff]  ;;  %v517_v48 = vld [vmem:[#allocation5 + $0x130] sm:$0xff]  ;;  %v483_v50 = vld [vmem:[#allocation5 + $0x20] sm:$0xff] }
  0x5f   : > { %1169 = vmatpush3.msra.mxu0 %v489_v26  ;;  %1271 = vmatpush3.msra.mxu1 %v522_v27  ;;  %v516_v51 = vld [vmem:[#allocation5 + $0x128] sm:$0xff]  ;;  %v498_v52 = vld [vmem:[#allocation5 + $0x98] sm:$0xff]  ;;  %v515_v54 = vld [vmem:[#allocation5 + $0x120] sm:$0xff] }
  0x60   : > { %443 = vperm.xlu1 %1457, %v341_v21   ;;  %398 = vperm.xlu0 %1456, %v337_v22   ;;  %v482_v53 = vld [vmem:[#allocation5 + $0x18] sm:$0xff]  ;;  %v497_v55 = vld [vmem:[#allocation5 + $0x90] sm:$0xff]  ;;  %v496_v57 = vld [vmem:[#allocation5 + $0x88] sm:$0xff] }
  0x61   : > { %1170 = vmatprep.subr.mxu0 %v504_v30  ;;  %1272 = vmatprep.subr.mxu1 %v521_v32  ;;  %v481_v56 = vld [vmem:[#allocation5 + $0x10] sm:$0xff]  ;;  %v514_v58 = vld [vmem:[#allocation5 + $0x118] sm:$0xff]  ;;  %v480_v59 = vld [vmem:[#allocation5 + $0x8] sm:$0xff] }
  0x62   : > { %1171 = vmatpush3.msra.mxu0 %v488_v31  ;;  %1273 = vmatpush3.msra.mxu1 %v521_v32  ;;  %v1880_v60 = vld [vmem:[%s1821_s12] sm:$0xff]  ;;  %v513_v62 = vld [vmem:[#allocation5 + $0x110] sm:$0xff]  ;;  %v1886_v0 = vld [vmem:[%s2163_s4 + $0x78] sm:$0xff] }
  0x63   : > { %1172 = vmatprep.subr.mxu0 %v503_v33  ;;  %1274 = vmatprep.subr.mxu1 %v520_v37  ;;  %v495_v61 = vld [vmem:[#allocation5 + $0x80] sm:$0xff]  ;;  %v512_v1 = vld [vmem:[#allocation5 + $0x108] sm:$0xff]  ;;  %v1893_v5 = vld [vmem:[%s1821_s12 + $0x38] sm:$0xff]  ;;  %v347_v6 = vrot.slane %v1880_v60, 7  ;;  %v414_v11 = vrot.slane %v1880_v60, 1 }
  0x64   : > { %448 = vperm.xlu1 %1457, %v342_v28   ;;  %403 = vperm.xlu0 %1456, %v338_v29   ;;  %v479_v63 = vld [vmem:[#allocation5] sm:$0xff]  ;;  %v354_v7 = vrot.slane %v1893_v5, 7  ;;  %v1899_v8 = vld [vmem:[%s1821_s12 + $0x8] sm:$0xff]  ;;  %v1909_v13 = vld [vmem:[%s1821_s12 + $0x10] sm:$0xff] }
  0x65   : > { %1173 = vmatpush3.msra.mxu0 %v487_v36  ;;  %1275 = vmatpush3.msra.mxu1 %v520_v37  ;;  %v511_v2 = vld [vmem:[#allocation5 + $0x100] sm:$0xff]  ;;  %v348_v9 = vrot.slane %v1899_v8, 7  ;;  %v415_v12 = vrot.slane %v1899_v8, 1  ;;  %v349_v17 = vrot.slane %v1909_v13, 7  ;;  %v751_v19 = vld [vmem:[%s2163_s4 + $0x70] sm:$0xff]  ;;  %v416_v21 = vrot.slane %v1909_v13, 1 }
  0x66   : > { %1174 = vmatprep.subr.mxu0 %v502_v38  ;;  %1276 = vmatprep.subr.mxu1 %v519_v40  ;;  %v365_v10 = vsel %vm357_vm0, %v354_v7, %v347_v6  ;;  %v750_v24 = vld [vmem:[%s2163_s4 + $0x68] sm:$0xff]  ;;  %v1929_v27 = vld [vmem:[%s1821_s12 + $0x18] sm:$0xff]  ;;  %v749_v30 = vld [vmem:[%s2163_s4 + $0x60] sm:$0xff] }
  0x67   : > { %1175 = vmatpush3.msra.mxu0 %v486_v39  ;;  %1277 = vmatpush3.msra.mxu1 %v519_v40  ;;  %v364_v18 = vsel %vm357_vm0, %v347_v6, %v348_v9  ;;  %v429_v20 = vsel %vm422_vm1, %v414_v11, %v415_v12  ;;  %v363_v28 = vsel %vm357_vm0, %v348_v9, %v349_v17  ;;  %v350_v32 = vrot.slane %v1929_v27, 7  ;;  %v1944_v37 = vld [vmem:[%s1821_s12 + $0x20] sm:$0xff]  ;;  %v747_v38 = vld [vmem:[%s2163_s4 + $0x50] sm:$0xff]  ;;  %v742_v3 = vld [vmem:[%s2163_s4 + $0x28] sm:$0xff] }
  0x68   : > { %458 = vperm.xlu1 %1457, %v344_v34   ;;  %453 = vperm.xlu0 %1456, %v343_v35   ;;  %v428_v29 = vsel %vm422_vm1, %v415_v12, %v416_v21  ;;  %v748_v34 = vld [vmem:[%s2163_s4 + $0x58] sm:$0xff]  ;;  %v417_v39 = vrot.slane %v1929_v27, 1  ;;  %v737_v4 = vld [vmem:[%s2163_s4] sm:$0xff] }
  0x69   : > { %1176 = vmatprep.subr.mxu0 %v501_v43  ;;  %1278 = vmatprep.subr.mxu1 %v518_v45  ;;  %v362_v40 = vsel %vm357_vm0, %v349_v17, %v350_v32  ;;  %v351_v43 = vrot.slane %v1944_v37, 7 }
  0x6a   : > { %1177 = vmatpush3.msra.mxu0 %v485_v44  ;;  %1279 = vmatpush3.msra.mxu1 %v518_v45  ;;  %v746_v44 = vld [vmem:[%s2163_s4 + $0x48] sm:$0xff] }
  0x6b   : > { %1178 = vmatprep.subr.mxu0 %v500_v46  ;;  %1280 = vmatprep.subr.mxu1 %v517_v48  ;;  %v1958_v46 = vld [vmem:[%s1821_s12 + $0x28] sm:$0xff] }
  0x6c   : > { %468 = vperm.xlu1 %1457, %v346_v41   ;;  %463 = vperm.xlu0 %1456, %v345_v42  }
  0x6d   : > { %1179 = vmatpush3.msra.mxu0 %v484_v47  ;;  %1281 = vmatpush3.msra.mxu1 %v517_v48  ;;  %v427_v47 = vsel %vm422_vm1, %v416_v21, %v417_v39 }
  0x6e   : > { %1180 = vmatprep.subr.mxu0 %v499_v49  ;;  %1282 = vmatprep.subr.mxu1 %v516_v51 }
  0x6f   : > { %1181 = vmatpush3.msra.mxu0 %v483_v50  ;;  %1283 = vmatpush3.msra.mxu1 %v516_v51  ;;  %v745_v50 = vld [vmem:[%s2163_s4 + $0x40] sm:$0xff]  ;;  %v361_v51 = vsel %vm357_vm0, %v350_v32, %v351_v43 }
  0x70   : > { %1182 = vmatprep.subr.mxu0 %v498_v52  ;;  %1284 = vmatprep.subr.mxu1 %v515_v54  ;;  %v418_v52 = vrot.slane %v1944_v37, 1 }
  0x71   : > { %1183 = vmatpush3.msra.mxu0 %v482_v53  ;;  %1285 = vmatpush3.msra.mxu1 %v515_v54  ;;  %v352_v53 = vrot.slane %v1958_v46, 7 }
  0x72   : > { %1184 = vmatprep.subr.mxu0 %v497_v55  ;;  %591 = vmatprep.mubr.f32.mxu0 %v1880_v60  ;;  %v744_v55 = vld [vmem:[%s2163_s4 + $0x38] sm:$0xff] }
  0x73   : > { %1185 = vmatpush3.msra.mxu0 %v481_v56  ;;  %1286 = vmatprep.subr.mxu1 %v514_v58 }
  0x74   : > { %1186 = vmatprep.subr.mxu0 %v496_v57  ;;  %1287 = vmatpush3.msra.mxu1 %v514_v58  ;;  %v1977_v58 = vld [vmem:[%s1821_s12 + $0x30] sm:$0xff]  ;;  %s2048_s12 = scalar_lea.vmem [#allocation8], %s1817_s3 }
  0x75   : > { %1187 = vmatpush3.msra.mxu0 %v480_v59  ;;  %1288 = vmatprep.subr.mxu1 %v513_v62  ;;  %v420_v6 = vrot.slane %v1977_v58, 1 }
  0x76   : > { %1188 = vmatprep.subr.mxu0 %v495_v61  ;;  %1289 = vmatpush3.msra.mxu1 %v513_v62  ;;  %v426_v61 = vsel %vm422_vm1, %v417_v39, %v418_v52  ;;  %v743_v62 = vld [vmem:[%s2163_s4 + $0x30] sm:$0xff] }
  0x77   : > { %1189 = vmatpush3.msra.mxu0 %v479_v63  ;;  %1290 = vmatprep.subr.mxu1 %v512_v1  ;;  %v360_v63 = vsel %vm357_vm0, %v351_v43, %v352_v53 }
  0x78   : > { %1306 = vmatprep.subr.mxu0 %v1886_v0  ;;  %1291 = vmatpush3.msra.mxu1 %v512_v1  ;;  %v353_v1 = vrot.slane %v1977_v58, 7 }
  0x79   : > { %1292 = vmatprep.subr.mxu1 %v511_v2 }
  0x7a   : > { %1293 = vmatpush3.msra.mxu1 %v511_v2 }
  0x7b   : > { %1350 = vmatprep.subr.mxu1 %v1886_v0 }
  0xcb   : > { %v379_v14 = vpop.permute.xlu1 %378  ;;  %v369_v15 = vpop.permute.xlu0 %368 }
  0xcc   : > { %v406_v16 = vmul.f32 %v369_v15, %v365_v10  ;;  %v408_v35 = vmul.f32 %v379_v14, %v363_v28  ;;  %v741_v14 = vld [vmem:[%s2163_s4 + $0x20] sm:$0xff]  ;;  %v359_v15 = vsel %vm357_vm0, %v352_v53, %v353_v1 }
  0xce   : > { %592 = vmatmul.mubr.f32.vlgmr.msra.gmra.mxu0 %v406_v16 }
  0xcf   : > { %1307 = vmatpush3.msra.mxu0 %v1886_v0  ;;  %v434_v22 = vpop.permute.xlu1 %433  ;;  %v374_v23 = vpop.permute.xlu0 %373  ;;  %596 = vmatprep.mubr.f32.mxu0 %v1899_v8 }
  0xd0   : > { %v407_v25 = vmul.f32 %v374_v23, %v364_v18  ;;  %1308 = vmatprep.subr.mxu0 %v751_v19  ;;  %v471_v26 = vmul.f32 %v434_v22, %v429_v20  ;;  %v421_v18 = vrot.slane %v1893_v5, 1  ;;  %v740_v20 = vld [vmem:[%s2163_s4 + $0x18] sm:$0xff] }
  0xd1   : > { %1309 = vmatpush3.msra.mxu0 %v751_v19 }
  0xd2   : > { %1310 = vmatprep.subr.mxu0 %v750_v24  ;;  %597 = vmatmul.mubr.f32.gmra.mxu0 %v407_v25  ;;  %v739_v25 = vld [vmem:[%s2163_s4 + $0x10] sm:$0xff] }
  0xd3   : > { %1294 = vmatprep.mubr.f32.mxu1 %v471_v26  ;;  %1311 = vmatpush3.msra.mxu0 %v750_v24  ;;  %v384_v31 = vpop.permute.xlu1 %383  ;;  %v439_v33 = vpop.permute.xlu0 %438  ;;  %v358_v26 = vsel %vm357_vm0, %v353_v1, %v354_v7 }
  0xd4   : > { %v472_v36 = vmul.f32 %v439_v33, %v428_v29  ;;  %1312 = vmatprep.subr.mxu0 %v749_v30  ;;  %601 = vmatprep.mubr.f32.mxu0 %v1909_v13  ;;  %v409_v45 = vmul.f32 %v384_v31, %v362_v40  ;;  %v430_v29 = vsel %vm422_vm1, %v421_v18, %v414_v11  ;;  %v738_v31 = vld [vmem:[%s2163_s4 + $0x8] sm:$0xff] }
  0xd5   : > { %1313 = vmatpush3.msra.mxu0 %v749_v30 }
  0xd6   : > { %1314 = vmatprep.subr.mxu0 %v748_v34  ;;  %602 = vmatmul.mubr.f32.gmra.mxu0 %v408_v35 }
  0xd7   : > { %1295 = vmatmul.mubr.f32.vlgmr.msra.gmra.mxu1 %v472_v36  ;;  %1315 = vmatpush3.msra.mxu0 %v748_v34  ;;  %v394_v41 = vpop.permute.xlu1 %393  ;;  %v389_v42 = vpop.permute.xlu0 %388 }
  0xd8   : > { %1366 = vmatpush3.msra.mxu1 %v1886_v0  ;;  %1316 = vmatprep.subr.mxu0 %v747_v38  ;;  %v410_v56 = vmul.f32 %v389_v42, %v361_v51  ;;  %v419_v0 = vrot.slane %v1958_v46, 1  ;;  %v411_v9 = vmul.f32 %v394_v41, %v360_v63 }
  0xd9   : > { %1351 = vmatprep.subr.mxu1 %v751_v19  ;;  %1317 = vmatpush3.msra.mxu0 %v747_v38 }
  0xda   : > { %1367 = vmatpush3.msra.mxu1 %v751_v19  ;;  %606 = vmatprep.mubr.f32.mxu0 %v1929_v27  ;;  %v425_v12 = vsel %vm422_vm1, %v418_v52, %v419_v0  ;;  %v424_v17 = vsel %vm422_vm1, %v419_v0, %v420_v6 }
  0xdb   : > { %1352 = vmatprep.subr.mxu1 %v750_v24  ;;  %1318 = vmatprep.subr.mxu0 %v746_v44  ;;  %v444_v48 = vpop.permute.xlu1 %443  ;;  %v399_v49 = vpop.permute.xlu0 %398 }
  0xdc   : > { %607 = vmatmul.mubr.f32.gmra.mxu0 %v409_v45  ;;  %1368 = vmatpush3.msra.mxu1 %v750_v24  ;;  %v473_v54 = vmul.f32 %v444_v48, %v427_v47  ;;  %v412_v21 = vmul.f32 %v399_v49, %v359_v15  ;;  %v423_v24 = vsel %vm422_vm1, %v420_v6, %v421_v18 }
  0xdd   : > { %1319 = vmatpush3.msra.mxu0 %v746_v44  ;;  %1353 = vmatprep.subr.mxu1 %v749_v30 }
  0xde   : > { %1320 = vmatprep.subr.mxu0 %v745_v50  ;;  %1369 = vmatpush3.msra.mxu1 %v749_v30 }
  0xdf   : > { %1321 = vmatpush3.msra.mxu0 %v745_v50  ;;  %611 = vmatprep.mubr.f32.mxu0 %v1944_v37  ;;  %v1974_v57 = vpop.permute.xlu0 %403  ;;  %v449_v59 = vpop.permute.xlu1 %448 }
  0xe0   : > { %1354 = vmatprep.subr.mxu1 %v748_v34  ;;  %1322 = vmatprep.subr.mxu0 %v744_v55  ;;  %v474_v2 = vmul.f32 %v449_v59, %v426_v61  ;;  %v413_v32 = vmul.f32 %v1974_v57, %v358_v26 }
  0xe1   : > { %612 = vmatmul.mubr.f32.gmra.mxu0 %v410_v56  ;;  %1297 = vmatprep.mubr.f32.mxu1 %v473_v54 }
  0xe2   : > { %1370 = vmatpush3.msra.mxu1 %v748_v34  ;;  %1323 = vmatpush3.msra.mxu0 %v744_v55 }
  0xe3   : > { %1355 = vmatprep.subr.mxu1 %v747_v38  ;;  %1324 = vmatprep.subr.mxu0 %v743_v62  ;;  %v454_v10 = vpop.permute.xlu0 %453  ;;  %v459_v16 = vpop.permute.xlu1 %458 }
  0xe4   : > { %1371 = vmatpush3.msra.mxu1 %v747_v38  ;;  %1325 = vmatpush3.msra.mxu0 %v743_v62  ;;  %v475_v19 = vmul.f32 %v454_v10, %v425_v12  ;;  %v476_v22 = vmul.f32 %v459_v16, %v424_v17 }
  0xe5   : > { %616 = vmatprep.mubr.f32.mxu0 %v1958_v46  ;;  %1356 = vmatprep.subr.mxu1 %v746_v44 }
  0xe6   : > { %1326 = vmatprep.subr.mxu0 %v742_v3  ;;  %617 = vmatmul.mubr.f32.gmra.mxu0 %v411_v9 }
  0xe7   : > { %1298 = vmatmul.mubr.f32.gmra.mxu1 %v474_v2  ;;  %1327 = vmatpush3.msra.mxu0 %v742_v3  ;;  %v464_v23 = vpop.permute.xlu0 %463  ;;  %v469_v28 = vpop.permute.xlu1 %468 }
  0xe8   : > { %1372 = vmatpush3.msra.mxu1 %v746_v44  ;;  %1328 = vmatprep.subr.mxu0 %v741_v14  ;;  %v477_v30 = vmul.f32 %v464_v23, %v423_v24  ;;  %v478_v7 = vmul.f32 %v469_v28, %v430_v29 }
  0xe9   : > { %1357 = vmatprep.subr.mxu1 %v745_v50  ;;  %1329 = vmatpush3.msra.mxu0 %v741_v14 }
  0xea   : > { %1373 = vmatpush3.msra.mxu1 %v745_v50  ;;  %621 = vmatprep.mubr.f32.mxu0 %v1977_v58 }
  0xeb   : > { %1358 = vmatprep.subr.mxu1 %v744_v55  ;;  %1330 = vmatprep.subr.mxu0 %v740_v20 }
  0xec   : > { %622 = vmatmul.mubr.f32.gmra.mxu0 %v412_v21  ;;  %1300 = vmatprep.mubr.f32.mxu1 %v475_v19 }
  0xed   : > { %1374 = vmatpush3.msra.mxu1 %v744_v55  ;;  %1331 = vmatpush3.msra.mxu0 %v740_v20 }
  0xee   : > { %1301 = vmatmul.mubr.f32.gmra.mxu1 %v476_v22  ;;  %1359 = vmatprep.subr.mxu1 %v743_v62 }
  0xef   : > { %1332 = vmatprep.subr.mxu0 %v739_v25  ;;  %1375 = vmatpush3.msra.mxu1 %v743_v62 }
  0xf0   : > { %1333 = vmatpush3.msra.mxu0 %v739_v25  ;;  %626 = vmatprep.mubr.f32.mxu0 %v1893_v5 }
  0xf1   : > { %1360 = vmatprep.subr.mxu1 %v742_v3  ;;  %1334 = vmatprep.subr.mxu0 %v738_v31 }
  0xf2   : > { %627 = vmatmul.mubr.f32.gmra.mxu0 %v413_v32  ;;  %1303 = vmatprep.mubr.f32.mxu1 %v477_v30 }
  0xf3   : > { %1376 = vmatpush3.msra.mxu1 %v742_v3  ;;  %1335 = vmatpush3.msra.mxu0 %v738_v31 }
  0xf4   : > { %1304 = vmatmul.mubr.f32.gmra.mxu1 %v478_v7  ;;  %1361 = vmatprep.subr.mxu1 %v741_v14 }
  0xf5   : > { %1336 = vmatprep.subr.mxu0 %v737_v4  ;;  %1377 = vmatpush3.msra.mxu1 %v741_v14 }
  0xf6   : > { %1337 = vmatpush3.msra.mxu0 %v737_v4  ;;  %1362 = vmatprep.subr.mxu1 %v740_v20 }
  0xf7   : > { %1338 = vmatprep.mubr.f32.mxu0 %v1880_v60  ;;  %1378 = vmatpush3.msra.mxu1 %v740_v20 }
  0xf8   : > { %1339 = vmatmul.mubr.f32.vlgmr.msra.gmra.mxu0 %v1899_v8  ;;  %1363 = vmatprep.subr.mxu1 %v739_v25 }
  0xf9   : > { %1379 = vmatpush3.msra.mxu1 %v739_v25  ;;  %1341 = vmatprep.mubr.f32.mxu0 %v1909_v13 }
  0xfa   : > { %1364 = vmatprep.subr.mxu1 %v738_v31  ;;  %1344 = vmatprep.mubr.f32.mxu1 %v1944_v37 }
  0xfb   : > { %1380 = vmatpush3.msra.mxu1 %v738_v31 }
  0xfc   : > { %1342 = vmatmul.mubr.f32.gmra.mxu0 %v1929_v27  ;;  %1365 = vmatprep.subr.mxu1 %v737_v4 }
  0xfd   : > { %1381 = vmatpush3.msra.mxu1 %v737_v4 }
  0xfe   : > { %1345 = vmatmul.mubr.f32.vlgmr.msra.gmra.mxu1 %v1958_v46 }
  0xff   : > { %1347 = vmatprep.mubr.f32.mxu1 %v1977_v58 }
 0x102   : > { %1348 = vmatmul.mubr.f32.gmra.mxu1 %v1893_v5 }
 0x18e   : > { %v1190_v60 = vpop.f32.mrf.mxu0 }
 0x190   : > { %v1191_v8 = vpop.f32.mrf.mxu0 }
 0x191   : > { %v1192_v36 = vadd.f32 %v1191_v8, %v1190_v60 }
 0x192   : > { %v1193_v11 = vpop.f32.mrf.mxu0 }
 0x194   : > { %v1194_v33 = vpop.f32.mrf.mxu0 }
 0x195   : > { %v1195_v13 = vadd.f32 %v1194_v33, %v1193_v11 }
 0x196   : > { %v1196_v34 = vpop.f32.mrf.mxu0 }
 0x197   : > { %v1296_v35 = vpop.f32.mrf.mxu1 }
 0x198   : > { %v704_v37 = vadd.f32 %v1296_v35, %v1195_v13  ;;  %v1197_v38 = vpop.f32.mrf.mxu0 }
 0x199   : > { %v698_v27 = vpop.f32.mrf.mxu1  ;;  %v1198_v46 = vadd.f32 %v1197_v38, %v1196_v34 }
 0x19a   : > { %859 = vst [vmem:[%s2037_s20 + $0x8] sm:$0xff] %v704_v37  ;;  %v699_v39 = vadd.f32 %v1192_v36, %v698_v27  ;;  %v888_v51 = vmul.f32 %v704_v37, %v704_v37 }
 0x19c   : > { %858 = vst [vmem:[%s2037_s20] sm:$0xff] %v699_v39  ;;  %v1199_v5 = vpop.f32.mrf.mxu0  ;;  %v887_v47 = vmul.f32 %v699_v39, %v699_v39  ;;  %v874_v52 = vadd.f32 %v704_v37, %v699_v39 }
 0x19e   : > { %v1200_v40 = vpop.f32.mrf.mxu0  ;;  %v895_v55 = vadd.f32 %v888_v51, %v887_v47 }
 0x19f   : > { %v1201_v43 = vadd.f32 %v1200_v40, %v1199_v5 }
 0x1a1   : > { %v1202_v41 = vpop.f32.mrf.mxu0 }
 0x1a3   : > { %v1203_v42 = vpop.f32.mrf.mxu0 }
 0x1a4   : > { %v1204_v63 = vadd.f32 %v1203_v42, %v1202_v41 }
 0x1a6   : > { %v1205_v44 = vpop.f32.mrf.mxu0 }
 0x1a7   : > { %v1299_v45 = vpop.f32.mrf.mxu1 }
 0x1a8   : > { %v714_v48 = vadd.f32 %v1299_v45, %v1201_v43  ;;  %v1206_v49 = vpop.f32.mrf.mxu0 }
 0x1a9   : > { %v708_v50 = vpop.f32.mrf.mxu1  ;;  %v1207_v54 = vadd.f32 %v1206_v49, %v1205_v44 }
 0x1aa   : > { %861 = vst [vmem:[%s2037_s20 + $0x18] sm:$0xff] %v714_v48  ;;  %v709_v53 = vadd.f32 %v1198_v46, %v708_v50  ;;  %v890_v0 = vmul.f32 %v714_v48, %v714_v48 }
 0x1ac   : > { %860 = vst [vmem:[%s2037_s20 + $0x10] sm:$0xff] %v709_v53  ;;  %v875_v56 = vadd.f32 %v874_v52, %v709_v53  ;;  %v889_v57 = vmul.f32 %v709_v53, %v709_v53  ;;  %v1208_v58 = vpop.f32.mrf.mxu0 }
 0x1ae   : > { %v896_v59 = vadd.f32 %v895_v55, %v889_v57  ;;  %v1302_v61 = vpop.f32.mrf.mxu1  ;;  %v1209_v62 = vpop.f32.mrf.mxu0  ;;  %v876_v2 = vadd.f32 %v875_v56, %v714_v48 }
 0x1af   : > { %v724_v1 = vadd.f32 %v1302_v61, %v1207_v54  ;;  %v1210_v15 = vadd.f32 %v1209_v62, %v1208_v58 }
 0x1b0   : > { %v718_v3 = vpop.f32.mrf.mxu1  ;;  %v897_v9 = vadd.f32 %v896_v59, %v890_v0 }
 0x1b1   : > { %863 = vst [vmem:[%s2037_s20 + $0x28] sm:$0xff] %v724_v1  ;;  %v719_v6 = vadd.f32 %v1204_v63, %v718_v3  ;;  %v892_v18 = vmul.f32 %v724_v1, %v724_v1 }
 0x1b2   : > { %v1211_v10 = vpop.f32.mrf.mxu0 }
 0x1b3   : > { %862 = vst [vmem:[%s2037_s20 + $0x20] sm:$0xff] %v719_v6  ;;  %v877_v12 = vadd.f32 %v876_v2, %v719_v6  ;;  %v891_v14 = vmul.f32 %v719_v6, %v719_v6 }
 0x1b4   : > { %v1305_v16 = vpop.f32.mrf.mxu1  ;;  %v1212_v17 = vpop.f32.mrf.mxu0 }
 0x1b5   : > { %v898_v19 = vadd.f32 %v897_v9, %v891_v14  ;;  %v1213_v20 = vadd.f32 %v1212_v17, %v1211_v10  ;;  %v878_v21 = vadd.f32 %v877_v12, %v724_v1 }
 0x1b6   : > { %v728_v22 = vpop.f32.mrf.mxu1 }
 0x1b7   : > { %v734_v23 = vadd.f32 %v1305_v16, %v1213_v20  ;;  %v729_v24 = vadd.f32 %v1210_v15, %v728_v22  ;;  %v899_v25 = vadd.f32 %v898_v19, %v892_v18 }
 0x1b8   : > { %v1340_v26 = vpop.f32.mrf.mxu0 }
 0x1b9   : > { %865 = vst [vmem:[%s2037_s20 + $0x38] sm:$0xff] %v734_v23  ;;  %v894_v28 = vmul.f32 %v734_v23, %v734_v23  ;;  %864 = vst [vmem:[%s2037_s20 + $0x30] sm:$0xff] %v729_v24  ;;  %v879_v29 = vadd.f32 %v878_v21, %v729_v24  ;;  %v893_v30 = vmul.f32 %v729_v24, %v729_v24 }
 0x1ba   : > { %867 = vst [vmem:[%s2048_s12 + $0x8] sm:$0xff] %v1340_v26  ;;  %v819_v31 = vpop.f32.mrf.mxu0  ;;  %v922_v11 = vmul.f32 %v1340_v26, %v1340_v26 }
 0x1bb   : > { %v900_v32 = vadd.f32 %v899_v25, %v893_v30  ;;  %866 = vst [vmem:[%s2048_s12] sm:$0xff] %v819_v31  ;;  %v921_v7 = vmul.f32 %v819_v31, %v819_v31  ;;  %v880_v4 = vadd.f32 %v879_v29, %v734_v23  ;;  %v908_v33 = vadd.f32 %v1340_v26, %v819_v31 }
 0x1bc   : > { %v1343_v60 = vpop.f32.mrf.mxu0 }
 0x1bd   : > { %v901_v8 = vadd.f32 %v900_v32, %v894_v28  ;;  %869 = vst [vmem:[%s2048_s12 + $0x18] sm:$0xff] %v1343_v60  ;;  %v929_v36 = vadd.f32 %v922_v11, %v921_v7  ;;  %v881_v27 = vrot.slane %v880_v4, 4  ;;  %v924_v5 = vmul.f32 %v1343_v60, %v1343_v60 }
 0x1be   : > { %v829_v13 = vpop.f32.mrf.mxu0  ;;  %v1346_v34 = vpop.f32.mrf.mxu1 }
 0x1bf   : > { %v902_v35 = vrot.slane %v901_v8, 4  ;;  %868 = vst [vmem:[%s2048_s12 + $0x10] sm:$0xff] %v829_v13  ;;  %v909_v37 = vadd.f32 %v908_v33, %v829_v13  ;;  %v923_v38 = vmul.f32 %v829_v13, %v829_v13  ;;  %871 = vst [vmem:[%s2048_s12 + $0x28] sm:$0xff] %v1346_v34  ;;  %v882_v47 = vadd.f32 %v881_v27, %v880_v4 }
 0x1c0   : > { %v839_v39 = vpop.f32.mrf.mxu1  ;;  %v926_v49 = vmul.f32 %v1346_v34, %v1346_v34 }
 0x1c1   : > { %v910_v40 = vadd.f32 %v1343_v60, %v909_v37  ;;  %v930_v41 = vadd.f32 %v929_v36, %v923_v38  ;;  %870 = vst [vmem:[%s2048_s12 + $0x20] sm:$0xff] %v839_v39  ;;  %v903_v42 = vadd.f32 %v902_v35, %v901_v8  ;;  %v925_v43 = vmul.f32 %v839_v39, %v839_v39 }
 0x1c2   : > { %v1349_v44 = vpop.f32.mrf.mxu1  ;;  %v883_v56 = vrot.slane %v882_v47, 2 }
 0x1c3   : > { %v931_v45 = vadd.f32 %v930_v41, %v924_v5  ;;  %v911_v46 = vadd.f32 %v910_v40, %v839_v39  ;;  %873 = vst [vmem:[%s2048_s12 + $0x38] sm:$0xff] %v1349_v44  ;;  %v904_v52 = vrot.slane %v903_v42, 2  ;;  %v928_v57 = vmul.f32 %v1349_v44, %v1349_v44 }
 0x1c4   : > { %v849_v48 = vpop.f32.mrf.mxu1  ;;  %v884_v0 = vadd.f32 %v883_v56, %v882_v47 }
 0x1c5   : > { %v932_v50 = vadd.f32 %v931_v45, %v925_v43  ;;  %872 = vst [vmem:[%s2048_s12 + $0x30] sm:$0xff] %v849_v48  ;;  %v912_v51 = vadd.f32 %v1346_v34, %v911_v46  ;;  %v927_v53 = vmul.f32 %v849_v48, %v849_v48  ;;  %v905_v61 = vadd.f32 %v904_v52, %v903_v42 }
 0x1c6   : > { %v885_v10 = vrot.slane %v884_v0, 1 }
 0x1c7   : > { %v913_v54 = vadd.f32 %v912_v51, %v849_v48  ;;  %v933_v55 = vadd.f32 %v932_v50, %v926_v49  ;;  %v906_v3 = vrot.slane %v905_v61, 1 }
 0x1c8   : > { %v886_v18 = vadd.f32 %v885_v10, %v884_v0 }
 0x1c9   : > { %v914_v58 = vadd.f32 %v1349_v44, %v913_v54  ;;  %v934_v59 = vadd.f32 %v933_v55, %v927_v53  ;;  %v907_v15 = vadd.f32 %v906_v3, %v905_v61 }
 0x1cb   : > { %v915_v62 = vrot.slane %v914_v58, 4  ;;  %v935_v63 = vadd.f32 %v934_v59, %v928_v57  ;;  %v943_v21 = vsel %vm942_vm2, %v886_v18, %v907_v15 }
 0x1cd   : > { %v916_v1 = vadd.f32 %v915_v62, %v914_v58  ;;  %v936_v2 = vrot.slane %v935_v63, 4 }
 0x1cf   : > { %v917_v6 = vrot.slane %v916_v1, 2  ;;  %v937_v9 = vadd.f32 %v936_v2, %v935_v63 }
 0x1d1   : > { %v918_v12 = vadd.f32 %v917_v6, %v916_v1  ;;  %v938_v14 = vrot.slane %v937_v9, 2 }
 0x1d3   : > { %v919_v16 = vrot.slane %v918_v12, 1  ;;  %v939_v17 = vadd.f32 %v938_v14, %v937_v9 }
 0x1d5   : > { %v920_v19 = vadd.f32 %v919_v16, %v918_v12  ;;  %v940_v20 = vrot.slane %v939_v17, 1  ;;  %951 = sbr.rel (%p2189_p3) target bundleno = 475 (0x1db), region = 52 }
 0x1d7   : > { %v941_v22 = vadd.f32 %v940_v20, %v939_v17  ;;  %v945_v23 = vsel %vm944_vm3, %v943_v21, %v920_v19 }
 0x1d9   : > { %v947_v24 = vsel %vm946_vm4, %v945_v23, %v941_v22 }
 0x1da   : > { %952 = vst [vmem:[#allocation10] sm:$0xf] %v947_v24 }
 0x1db PF: > { %p1144_p11 = scmp.le.s32.totalorder %s1711_s28, 0 }
 0x1dd   : > { %956 = sbr.rel (%p1144_p11) target bundleno = 486 (0x1e6), region = 56 }
 0x1e2   : > { %v957_v25 = vld [vmem:[#allocation10] sm:$0xf] }
 0x1e3   : > { %v958_v26 = vadd.f32 %v957_v25, %v947_v24 }
 0x1e5   : > { %959 = vst [vmem:[#allocation10] sm:$0xf] %v958_v26 }
 0x1e6 PF: > { %s965_s3 = sand.u32 1, %s1711_s28   ;;  %s1156_s30 = sshll.u32 %s1711_s28, 10 }
 0x1e7   : > { %s2066_s23 = scalar_lea.hbm %s2165_s6, %s1156_s30  ;;  %s995_s29 = sshll.u32 %s2048_s12, 4  ;;  %s2069_s29 = int_to_ptr.vmem [resolvable:$true] %s995_s29 }
 0x1e8   : > { %s2074_s15 = scalar_lea.hbm %s2164_s5, %s1156_s30  ;;  %s2076_s9 = scalar_lea.sflag [#allocation9], %s965_s3 }
 0x1e9   : > { %s1512_s19 = scalar_lea.vmem %s2069_s29, 1024  ;;  %p2190_p8 = scmp.ne.s32.totalorder %s2181_s22, 0 }
 0x1ea   : > { %p1513_p7 = scmp.ne.s32.totalorder %s2069_s29, %s1512_s19  ;;  %s1645_s14 = smov [#allocation8]  }
 0x1eb   : > { %s1516_s16 = sshll.u32 %s1645_s14, 4  ;;  %s1517_s16 = int_to_ptr.vmem [resolvable:$false] %s1516_s16 }
 0x1ec   : > { %p1514_p10 = pnand %p1513_p7, %p2190_p8  ;;  %s1518_s12 = scalar_lea.vmem %s1517_s16, 2048 }
 0x1ed   : > { %p1519_p13 = scmp.lt.s32.totalorder %s2069_s29, %s1517_s16  ;;  %p1520_p0 = scmp.lt.s32.totalorder %s1518_s12, %s1512_s19 }
 0x1ee   : > { %p1515_p12 = pneg %p1514_p10 }
 0x1ef   : > { %p1521_p5 = por %p1520_p0, %p1519_p13 }
 0x1f1   : > { %p1522_p2 = pnand %p1521_p5, %p1515_p12 }
 0x1f3   : > { %1525 = shalt.err (!%p1522_p2)
}
 0x1f4   : > { %s1526_s3 = scalar_lea.hbm %s2066_s23, 1024  ;;  %s1530_s17 = scalar_lea.hbm %s2165_s6, 4096 }
 0x1f5   : > { %p1527_p1 = scmp.ne.s32.totalorder %s2066_s23, %s1526_s3  ;;  %p1531_p9 = scmp.lt.s32.totalorder %s2066_s23, %s2165_s6 }
 0x1f6   : > { %p1532_p3 = scmp.lt.s32.totalorder %s1530_s17, %s1526_s3 }
 0x1f7   : > { %p1528_p4 = pnand %p1527_p1, %p2190_p8 }
 0x1f8   : > { %p1533_p11 = por %p1532_p3, %p1531_p9 }
 0x1f9   : > { %p1529_p6 = pneg %p1528_p4 }
 0x1fb   : > { %p1534_p7 = pnand %p1533_p11, %p1529_p6 }
 0x1fd   : > { %1537 = shalt.err (!%p1534_p7)
}
 0x1fe   : > { %s1646_s19 = smov 128   ;;  %s1647_s16 = smov 8  }
 0x1ff   : > { %1389 = dma.vmem_to_hbm [thread:$0]  (%p2190_p8), %s2069_s29, 1024, %s2066_s23, %s2076_s9, %s1646_s19, %s1646_s19, %s1647_s16  }
 0x200   : > { %s979_s12 = sshll.u32 %s2037_s20, 4  ;;  %s961_s3 = scalar_lea.sflag [#allocation4], %s1814_s18  ;;  %s2103_s12 = int_to_ptr.vmem [resolvable:$true] %s979_s12 }
 0x201   : > { %s1538_s30 = scalar_lea.vmem %s2103_s12, 1024  ;;  %s1648_s11 = smov [#allocation7]  }
 0x202   : > { %p1539_p10 = scmp.ne.s32.totalorder %s2103_s12, %s1538_s30  ;;  %s1542_s17 = sshll.u32 %s1648_s11, 4  ;;  %s1543_s17 = int_to_ptr.vmem [resolvable:$false] %s1542_s17 }
 0x203   : > { %s1544_s10 = scalar_lea.vmem %s1543_s17, 2048  ;;  %p1545_p0 = scmp.lt.s32.totalorder %s2103_s12, %s1543_s17 }
 0x204   : > { %p1540_p12 = pnand %p1539_p10, %p2190_p8  ;;  %p1546_p5 = scmp.lt.s32.totalorder %s1544_s10, %s1538_s30 }
 0x206   : > { %p1541_p13 = pneg %p1540_p12  ;;  %p1547_p2 = por %p1546_p5, %p1545_p0 }
 0x208   : > { %p1548_p1 = pnand %p1547_p2, %p1541_p13 }
 0x20a   : > { %1551 = shalt.err (!%p1548_p1)
}
 0x20b   : > { %s1552_s20 = scalar_lea.hbm %s2074_s15, 1024  ;;  %s1556_s29 = scalar_lea.hbm %s2164_s5, 4096 }
 0x20c   : > { %p1553_p4 = scmp.ne.s32.totalorder %s2074_s15, %s1552_s20  ;;  %p1557_p3 = scmp.lt.s32.totalorder %s2074_s15, %s2164_s5 }
 0x20d   : > { %p1558_p11 = scmp.lt.s32.totalorder %s1556_s29, %s1552_s20 }
 0x20e   : > { %p1554_p6 = pnand %p1553_p4, %p2190_p8 }
 0x20f   : > { %p1559_p7 = por %p1558_p11, %p1557_p3 }
 0x210   : > { %p1555_p9 = pneg %p1554_p6 }
 0x212   : > { %p1560_p10 = pnand %p1559_p7, %p1555_p9 }
 0x214   : > { %1563 = shalt.err (!%p1560_p10)
}
 0x215   : > { %1388 = dma.vmem_to_hbm [thread:$0]  (%p2190_p8), %s2103_s12, 1024, %s2074_s15, %s961_s3, %s1646_s19, %s1646_s19, %s1647_s16  }
 0x216   : > { %s1649_s30 = smov [#allocation10]   ;;  %p2191_p13 = scmp.eq.s32.totalorder %s1711_s28, 3 }
 0x217   : > { %s1009_s11 = sshll.u32 %s1649_s30, 4  ;;  %s1010_s11 = int_to_ptr.vmem [resolvable:$true] %s1009_s11 }
 0x218   : > { %s1564_s17 = scalar_lea.vmem %s1010_s11, 64  ;;  %p1571_p2 = scmp.lt.s32.totalorder %s1010_s11, %s1010_s11 }
 0x219   : > { %p1565_p12 = scmp.ne.s32.totalorder %s1010_s11, %s1564_s17  ;;  %p1572_p1 = scmp.lt.s32.totalorder %s1564_s17, %s1564_s17 }
 0x21b   : > { %p1566_p0 = pnand %p1565_p12, %p2191_p13  ;;  %p1573_p4 = por %p1572_p1, %p1571_p2 }
 0x21d   : > { %p1567_p5 = pneg %p1566_p0 }
 0x21f   : > { %p1574_p6 = pnand %p1573_p4, %p1567_p5 }
 0x221   : > { %1577 = shalt.err (!%p1574_p6)
}
 0x222   : > { %p2192_p9 = pmov %p2191_p13 }
 0x224   : > { %1391 = dma.vmem_to_hbm [thread:$0]  (%p2192_p9), %s1010_s11, 64, %s2166_s7, [#allocation9]  }
 0x225   : > { %p2193_p8 = pmov %p2192_p9 }
 0x227   : > { %1613 = dma.done.wait (%p2193_p8), [#allocation9], 64   ;;  %p2194_p3 = pmov %p2193_p8 }
 0x229   : > { %1615 = vsyncadd (%p2194_p3), [#allocation9], 4294967232 }
 0x22a PF: > { %p1416_p11 = scmp.ge.s32.totalorder %s1638_s27, 2  ;;  %s1025_s15 = sand.u32 1, %s1626_s24  }
 0x22b   : > { %p2195_p7 = scmp.ne.s32.totalorder %s2176_s8, 0  ;;  %s1026_s19 = scalar_lea.sflag [#allocation4], %s1025_s15 }
 0x22d   : > { %p1405_p10 = pnand %p1416_p11, %p2195_p7 }
 0x22f   : > { %p1406_p12 = pneg %p1405_p10 }
 0x231   : > { %1617 = dma.done.wait (%p1406_p12), %s1026_s19, 1024  }
 0x232   : > { %1619 = vsyncadd (%p1406_p12), %s1026_s19, 4294966272  ;;  %s2196_s16 = sadd.s32 4294967294, %s1638_s27  }
 0x233   : > { %s1034_s12 = sand.u32 1, %s2196_s16  }
 0x234   : > { %s1035_s3 = scalar_lea.sflag [#allocation9], %s1034_s12 }
 0x235   : > { %1621 = dma.done.wait (%p1406_p12), %s1035_s3, 1024  }
 0x236   : > { %1623 = vsyncadd (%p1406_p12), %s1035_s3, 4294966272  ;;  %p25_p13 = scmp.ge.s32.totalorder %s1746_s13, 6   ;;  %s2197_s24 = smov %s1630_s25 }
 0x237   : > { %s2198_s25 = smov %s1634_s26  ;;  %s2199_s26 = smov %s1766_s21 }
 0x238   : > { %s2200_s27 = smov %s1746_s13  ;;  %27 = sbr.rel (!%p25_p13) target bundleno = 10 (0xa), region = 122 }
 0x23d   :  { %1040 = vsyncpa [#allocation3], 1 }
 0x23e   :  { %1042 = vsyncpa [#allocation3 + $0x1], 1 }
 0x23f   :  { %1043 = vsyncpa [#allocation6], 1 }
 0x240   :  { %1044 = vsyncpa [#allocation4], 1 }
 0x241   :  { %1046 = vsyncpa [#allocation4 + $0x1], 1 }
 0x242   :  { %1047 = vsyncpa [#allocation9], 1 }
 0x243   :  { %1049 = vsyncpa [#allocation9 + $0x1], 1 }

</bundles_post_ra>
